<compile_context>
chip_gen: v7x
topology: tpu7x:2x2x1
jax: 0.10.0
libtpu: 0.0.40
codegen_flags: <defaults>
</compile_context>

<pallas_src>
import math

import jax
import jax.numpy as jnp
from jax.experimental import pallas as pl
from jax.experimental.pallas import tpu as pltpu

LANE = 128      # vreg lane width (last dim)
SUBLANE = 8     # vreg sublane width (second-to-last dim)


def _round_up(x, m):
    return ((x + m - 1) // m) * m


def _pad2(a, rows, cols):
    r, c = a.shape
    return jnp.pad(a, ((0, rows - r), (0, cols - c)))


def policy_net_kernel(x_ref, w1_ref, b1_ref, w2_ref, b2_ref, w3_ref, b3_ref, o_ref):
    """tanh(fc3(relu(fc2(relu(fc1(x)))))) on one (TM, state_dim) batch tile.

    x arrives f32 and is cast to bf16 in-kernel.  Matmuls use bf16 operands
    with f32 accumulation; the elementwise epilogue stays f32 (VPU/EUP slots
    are free under the DMA-bound loop).  Weights/biases are VMEM-resident.
    """
    x = x_ref[...].astype(jnp.bfloat16)                                   # (TM, S)
    h1 = jnp.dot(x, w1_ref[...], preferred_element_type=jnp.float32) + b1_ref[...]
    h1 = jnp.maximum(h1, 0.0).astype(jnp.bfloat16)                        # relu(fc1(x))
    h2 = jnp.dot(h1, w2_ref[...], preferred_element_type=jnp.float32) + b2_ref[...]
    h2 = jnp.maximum(h2, 0.0).astype(jnp.bfloat16)                        # relu(fc2(.))
    h3 = jnp.dot(h2, w3_ref[...], preferred_element_type=jnp.float32) + b3_ref[...]
    o_ref[...] = jnp.tanh(h3).astype(o_ref.dtype)                         # tanh(fc3(.))


def prepare_policy_net_params(params):
    """One-time prep (do NOT call per forward): lane-pad the hidden dim of the
    resident weights/biases to 128 and cast matmul operands to bf16.

    Padded columns/rows are zeros, so the math on real features is unchanged
    (relu(0 + 0) = 0 propagates zeros through the padded lanes).
    Contraction dim of w1 (state_dim) and output dim of w3 (action_dim) are
    kept at their REAL sizes so x / out need no HBM padding.
    """
    state_dim, hidden_dim = params["w1"].shape
    action_dim = params["w3"].shape[1]
    hp = _round_up(hidden_dim, LANE)
    return {
        "w1": _pad2(params["w1"], state_dim, hp).astype(jnp.bfloat16),
        "b1": _pad2(params["b1"], 1, hp).astype(jnp.float32),
        "w2": _pad2(params["w2"], hp, hp).astype(jnp.bfloat16),
        "b2": _pad2(params["b2"], 1, hp).astype(jnp.float32),
        "w3": _pad2(params["w3"], hp, action_dim).astype(jnp.bfloat16),
        "b3": _pad2(params["b3"], 1, action_dim).astype(jnp.float32),
    }


def policy_net_forward(x, prepared, *, tile_m=None):
    """x: (batch, state_dim) f32.  prepared: output of prepare_policy_net_params."""
    batch, state_dim = x.shape
    assert prepared["w1"].shape[0] == state_dim, "state_dim mismatch with params"
    hp = prepared["w1"].shape[1]                 # lane-padded hidden dim
    action_dim = prepared["w3"].shape[1]

    # Batch tile: big enough to amortize ~0.35us/step grid overhead; clamped
    # so a tiny batch doesn't trigger a full tile of wasted work.
    if tile_m is None:
        tile_m = 2048
    tile_m = max(SUBLANE, _round_up(tile_m, SUBLANE))
    tile_m = min(tile_m, _round_up(batch, SUBLANE))
    batch_p = _round_up(batch, tile_m)
    grid = (batch_p // tile_m,)

    x = x.astype(jnp.float32)
    if batch_p != batch:
        # Cheap: last dim stays the real state_dim (no 128-lane inflation).
        x = jnp.pad(x, ((0, batch_p - batch), (0, 0)))

    # VMEM budget: double-buffered x/out tiles + (possibly double-buffered)
    # resident weights + f32 intermediates, 2x headroom, capped at 48 MiB to
    # leave compiler scratch headroom under v7x's 64 MiB physical VMEM.
    weight_bytes = sum(int(v.size) * v.dtype.itemsize for v in prepared.values())
    io_bytes = 2 * tile_m * state_dim * 4 + 2 * tile_m * action_dim * 4
    interm_bytes = 3 * tile_m * hp * 4
    vmem_limit = int(min(48 * 1024 * 1024,
                         max(16 * 1024 * 1024,
                             2 * (2 * weight_bytes + io_bytes + interm_bytes))))

    # Advisory cost hint for XLA's scheduler around the custom call.
    flops = 2 * batch_p * (state_dim * hp + hp * hp + hp * action_dim)
    bytes_accessed = (batch_p * state_dim * 4 + batch_p * action_dim * 4
                      + weight_bytes)
    cost = pl.CostEstimate(flops=flops,
                           transcendentals=batch_p * action_dim,
                           bytes_accessed=bytes_accessed)

    def resident(shape):
        # Same block index every grid step -> DMA'd once, stays in VMEM.
        return pl.BlockSpec(shape, lambda i: (0, 0))

    out_p = pl.pallas_call(
        policy_net_kernel,
        out_shape=jax.ShapeDtypeStruct((batch_p, action_dim), jnp.float32),
        grid=grid,
        in_specs=[
            pl.BlockSpec((tile_m, state_dim), lambda i: (i, 0)),   # x, unpadded lanes
            resident((state_dim, hp)), resident((1, hp)),          # fc1
            resident((hp, hp)),        resident((1, hp)),          # fc2
            resident((hp, action_dim)), resident((1, action_dim)), # fc3
        ],
        out_specs=pl.BlockSpec((tile_m, action_dim), lambda i: (i, 0)),
        compiler_params=pltpu.CompilerParams(
            dimension_semantics=("parallel",),
            vmem_limit_bytes=vmem_limit,
        ),
        cost_estimate=cost,
    )(x, prepared["w1"], prepared["b1"], prepared["w2"], prepared["b2"],
      prepared["w3"], prepared["b3"])

    return out_p[:batch] if batch_p != batch else out_p


def init_policy_net_params(key, state_dim, hidden_dim, action_dim):
    """Deterministic init mimicking PyTorch nn.Linear default (U(-1/sqrt(fan_in), +))."""
    def linear(key, fan_in, fan_out):
        kw, kb = jax.random.split(key)
        bound = 1.0 / math.sqrt(fan_in)
        # Stored as (in, out): transpose of torch's (out, in) weight layout.
        w = jax.random.uniform(kw, (fan_in, fan_out), jnp.float32, -bound, bound)
        b = jax.random.uniform(kb, (1, fan_out), jnp.float32, -bound, bound)
        return w, b

    k1, k2, k3 = jax.random.split(key, 3)
    w1, b1 = linear(k1, state_dim, hidden_dim)
    w2, b2 = linear(k2, hidden_dim, hidden_dim)
    w3, b3 = linear(k3, hidden_dim, action_dim)
    return {"w1": w1, "b1": b1, "w2": w2, "b2": b2, "w3": w3, "b3": b3}


def _ref_forward_bf16(x, p):
    """Pure-JAX reference using the same bf16-operand / f32-accum math."""
    xb = x.astype(jnp.bfloat16)
    h1 = jnp.dot(xb, p["w1"].astype(jnp.bfloat16),
                 preferred_element_type=jnp.float32) + p["b1"]
    h1 = jnp.maximum(h1, 0.0).astype(jnp.bfloat16)
    h2 = jnp.dot(h1, p["w2"].astype(jnp.bfloat16),
                 preferred_element_type=jnp.float32) + p["b2"]
    h2 = jnp.maximum(h2, 0.0).astype(jnp.bfloat16)
    h3 = jnp.dot(h2, p["w3"].astype(jnp.bfloat16),
                 preferred_element_type=jnp.float32) + p["b3"]
    return jnp.tanh(h3)


def _ref_forward_f32(x, p):
    h1 = jnp.maximum(x @ p["w1"] + p["b1"], 0.0)
    h2 = jnp.maximum(h1 @ p["w2"] + p["b2"], 0.0)
    return jnp.tanh(h2 @ p["w3"] + p["b3"])


if __name__ == "__main__":
    # Small shapes consistent with PolicyNet(state_dim, hidden_dim, action_dim).
    batch, state_dim, hidden_dim, action_dim = 2, 8, 32, 4

    key = jax.random.PRNGKey(0)
    k_params, k_x, k_x2 = jax.random.split(key, 3)

    params = init_policy_net_params(k_params, state_dim, hidden_dim, action_dim)
    prepared = prepare_policy_net_params(params)     # one-time pad/cast, hoisted
    x = jax.random.normal(k_x, (batch, state_dim), dtype=jnp.float32)

    out = policy_net_forward(x, prepared)
    out = jax.block_until_ready(out)
    assert out.shape == (batch, action_dim)

    # Tight check vs a reference that does the same bf16-MXU / f32-accum math.
    ref_bf16 = _ref_forward_bf16(x, params)
    assert jnp.allclose(out, ref_bf16, atol=1e-4, rtol=1e-4), "bf16-math mismatch"
    # Loose sanity check vs the full-f32 PyTorch-equivalent math.
    ref_f32 = _ref_forward_f32(x, params)
    assert jnp.allclose(out, ref_f32, atol=1e-1, rtol=1e-1), "f32 sanity mismatch"

    # Exercise a multi-step grid (several batch tiles, weights stay resident),
    # including a batch that is not a multiple of the tile size.
    x_big = jax.random.normal(k_x2, (4100, state_dim), dtype=jnp.float32)
    out_big = jax.block_until_ready(policy_net_forward(x_big, prepared, tile_m=1024))
    assert out_big.shape == (4100, action_dim)
    assert jnp.allclose(out_big, _ref_forward_bf16(x_big, params),
                        atol=1e-4, rtol=1e-4), "gridded bf16-math mismatch"

    print("KERNEL_OK")
</pallas_src>

<mosaic_0001>
module attributes {stable_mosaic.version = 11 : i64} {
  func.func @policy_net_kernel(%arg0: i32, %arg1: memref<8x8xf32, #tpu.memory_space<vmem>>, %arg2: memref<8x128xbf16, #tpu.memory_space<vmem>>, %arg3: memref<1x128xf32, #tpu.memory_space<vmem>>, %arg4: memref<128x128xbf16, #tpu.memory_space<vmem>>, %arg5: memref<1x128xf32, #tpu.memory_space<vmem>>, %arg6: memref<128x4xbf16, #tpu.memory_space<vmem>>, %arg7: memref<1x4xf32, #tpu.memory_space<vmem>>, %arg8: memref<8x4xf32, #tpu.memory_space<vmem>>) attributes {dimension_semantics = [#tpu.dimension_semantics<parallel>], iteration_bounds = array<i64: 1>, scalar_prefetch = 0 : i64, scratch_operands = 0 : i64, tpu.core_type = #tpu.core_type<tc>, window_params = [{transform_indices = @transform_0, window_bounds = array<i64: 8, 8>}, {pipeline_mode = #tpu.pipeline_mode<synchronous>, transform_indices = @transform_1, window_bounds = array<i64: 8, 128>}, {pipeline_mode = #tpu.pipeline_mode<synchronous>, transform_indices = @transform_2, window_bounds = array<i64: 1, 128>}, {pipeline_mode = #tpu.pipeline_mode<synchronous>, transform_indices = @transform_3, window_bounds = array<i64: 128, 128>}, {pipeline_mode = #tpu.pipeline_mode<synchronous>, transform_indices = @transform_4, window_bounds = array<i64: 1, 128>}, {pipeline_mode = #tpu.pipeline_mode<synchronous>, transform_indices = @transform_5, window_bounds = array<i64: 128, 4>}, {pipeline_mode = #tpu.pipeline_mode<synchronous>, transform_indices = @transform_6, window_bounds = array<i64: 1, 4>}, {transform_indices = @transform_7, window_bounds = array<i64: 8, 4>}]} {
    %c0 = arith.constant 0 : index
    %c0_0 = arith.constant 0 : index
    %0 = vector.load %arg1[%c0, %c0_0] : memref<8x8xf32, #tpu.memory_space<vmem>>, vector<8x8xf32>
    %1 = arith.truncf %0 : vector<8x8xf32> to vector<8x8xbf16>
    %c0_1 = arith.constant 0 : index
    %c0_2 = arith.constant 0 : index
    %2 = vector.load %arg2[%c0_1, %c0_2] : memref<8x128xbf16, #tpu.memory_space<vmem>>, vector<8x128xbf16>
    %cst = arith.constant dense<0.000000e+00> : vector<8x128xf32>
    %3 = tpu.matmul %1, %2, %cst {dimension_numbers = #tpu.dot_dimension_numbers<[1], [0], [0], [1], [0, 0, 1, 1], [], []>} : vector<8x8xbf16>, vector<8x128xbf16>, vector<8x128xf32> -> vector<8x128xf32>
    %c0_3 = arith.constant 0 : index
    %c0_4 = arith.constant 0 : index
    %4 = vector.load %arg3[%c0_3, %c0_4] : memref<1x128xf32, #tpu.memory_space<vmem>>, vector<1x128xf32>
    %5 = vector.broadcast %4 : vector<1x128xf32> to vector<8x128xf32>
    %6 = arith.addf %3, %5 : vector<8x128xf32>
    %cst_5 = arith.constant 0.000000e+00 : f32
    %7 = vector.broadcast %cst_5 : f32 to vector<8x128xf32>
    %8 = arith.maximumf %6, %7 : vector<8x128xf32>
    %9 = arith.truncf %8 : vector<8x128xf32> to vector<8x128xbf16>
    %c0_6 = arith.constant 0 : index
    %c0_7 = arith.constant 0 : index
    %10 = vector.load %arg4[%c0_6, %c0_7] : memref<128x128xbf16, #tpu.memory_space<vmem>>, vector<128x128xbf16>
    %cst_8 = arith.constant dense<0.000000e+00> : vector<8x128xf32>
    %11 = tpu.matmul %9, %10, %cst_8 {dimension_numbers = #tpu.dot_dimension_numbers<[1], [0], [0], [1], [0, 0, 1, 1], [], []>} : vector<8x128xbf16>, vector<128x128xbf16>, vector<8x128xf32> -> vector<8x128xf32>
    %c0_9 = arith.constant 0 : index
    %c0_10 = arith.constant 0 : index
    %12 = vector.load %arg5[%c0_9, %c0_10] : memref<1x128xf32, #tpu.memory_space<vmem>>, vector<1x128xf32>
    %13 = vector.broadcast %12 : vector<1x128xf32> to vector<8x128xf32>
    %14 = arith.addf %11, %13 : vector<8x128xf32>
    %cst_11 = arith.constant 0.000000e+00 : f32
    %15 = vector.broadcast %cst_11 : f32 to vector<8x128xf32>
    %16 = arith.maximumf %14, %15 : vector<8x128xf32>
    %17 = arith.truncf %16 : vector<8x128xf32> to vector<8x128xbf16>
    %c0_12 = arith.constant 0 : index
    %c0_13 = arith.constant 0 : index
    %18 = vector.load %arg6[%c0_12, %c0_13] : memref<128x4xbf16, #tpu.memory_space<vmem>>, vector<128x4xbf16>
    %cst_14 = arith.constant dense<0.000000e+00> : vector<8x4xf32>
    %19 = tpu.matmul %17, %18, %cst_14 {dimension_numbers = #tpu.dot_dimension_numbers<[1], [0], [0], [1], [0, 0, 1, 1], [], []>} : vector<8x128xbf16>, vector<128x4xbf16>, vector<8x4xf32> -> vector<8x4xf32>
    %c0_15 = arith.constant 0 : index
    %c0_16 = arith.constant 0 : index
    %20 = vector.load %arg7[%c0_15, %c0_16] : memref<1x4xf32, #tpu.memory_space<vmem>>, vector<1x4xf32>
    %21 = vector.broadcast %20 : vector<1x4xf32> to vector<8x4xf32>
    %22 = arith.addf %19, %21 : vector<8x4xf32>
    %23 = math.tanh %22 : vector<8x4xf32>
    %c0_17 = arith.constant 0 : index
    %c0_18 = arith.constant 0 : index
    %24 = vector.load %arg8[%c0_17, %c0_18] : memref<8x4xf32, #tpu.memory_space<vmem>>, vector<8x4xf32>
    tpu.vector_store %arg8[%c0_17, %c0_18], %23 {strides = array<i32>} : memref<8x4xf32, #tpu.memory_space<vmem>>, vector<8x4xf32>,
    return
  }
  func.func @transform_0(%arg0: i32) -> (i32, i32) {
    %c0_i32 = arith.constant 0 : i32
    %c0_i32_0 = arith.constant 0 : i32
    return %arg0, %c0_i32 : i32, i32
  }
  func.func @transform_1(%arg0: i32) -> (i32, i32) {
    %c0_i32 = arith.constant 0 : i32
    %c0_i32_0 = arith.constant 0 : i32
    %c0_i32_1 = arith.constant 0 : i32
    return %c0_i32, %c0_i32_0 : i32, i32
  }
  func.func @transform_2(%arg0: i32) -> (i32, i32) {
    %c0_i32 = arith.constant 0 : i32
    %c0_i32_0 = arith.constant 0 : i32
    %c0_i32_1 = arith.constant 0 : i32
    return %c0_i32, %c0_i32_0 : i32, i32
  }
  func.func @transform_3(%arg0: i32) -> (i32, i32) {
    %c0_i32 = arith.constant 0 : i32
    %c0_i32_0 = arith.constant 0 : i32
    %c0_i32_1 = arith.constant 0 : i32
    return %c0_i32, %c0_i32_0 : i32, i32
  }
  func.func @transform_4(%arg0: i32) -> (i32, i32) {
    %c0_i32 = arith.constant 0 : i32
    %c0_i32_0 = arith.constant 0 : i32
    %c0_i32_1 = arith.constant 0 : i32
    return %c0_i32, %c0_i32_0 : i32, i32
  }
  func.func @transform_5(%arg0: i32) -> (i32, i32) {
    %c0_i32 = arith.constant 0 : i32
    %c0_i32_0 = arith.constant 0 : i32
    %c0_i32_1 = arith.constant 0 : i32
    return %c0_i32, %c0_i32_0 : i32, i32
  }
  func.func @transform_6(%arg0: i32) -> (i32, i32) {
    %c0_i32 = arith.constant 0 : i32
    %c0_i32_0 = arith.constant 0 : i32
    %c0_i32_1 = arith.constant 0 : i32
    return %c0_i32, %c0_i32_0 : i32, i32
  }
  func.func @transform_7(%arg0: i32) -> (i32, i32) {
    %c0_i32 = arith.constant 0 : i32
    %c0_i32_0 = arith.constant 0 : i32
    return %arg0, %c0_i32 : i32, i32
  }
}

</mosaic_0001>

<bundles_post_ra>
// kernel: tpu_custom_call.1
= control target key start
LH: loop header
LB: loop body
LE: loop exit
PB: predicated region body
PF: predicated region fallthrough
CT: control target
= control target key end

     0   :  { %vm41_vm0 = vcmask 1043456   ;;  %v424_v0 = vmov 0.0   ;;  %vm425_vm1 = vmmov 0   ;;  %vm37_vm2 = vcmask 64512   ;;  %s555_s1 = inlined_call_operand.vmem [shape: bf16[8,128], index: 1, kind: input, shape index: {}]   ;;  %s556_s0 = inlined_call_operand.vmem [shape: f32[8,8], index: 0, kind: input, shape index: {}]   ;;  %s557_s3 = inlined_call_operand.vmem [shape: bf16[128,128], index: 3, kind: input, shape index: {}]   ;;  %s558_s5 = inlined_call_operand.vmem [shape: bf16[128,4], index: 5, kind: input, shape index: {}]   ;;  %s559_s2 = inlined_call_operand.vmem [shape: f32[1,128], index: 2, kind: input, shape index: {}]   ;;  %s560_s4 = inlined_call_operand.vmem [shape: f32[1,128], index: 4, kind: input, shape index: {}]   ;;  %s561_s6 = inlined_call_operand.vmem [shape: f32[1,4], index: 6, kind: input, shape index: {}]   ;;  %s562_s7 = inlined_call_operand.vmem [shape: f32[8,4], index: 7, kind: output, shape index: {}]  }
   0x1   :  { %358 = vmatprep.subr.bf16.mxu0 %v424_v0  ;;  %v29_v1 = vld [vmem:[%s555_s1] sm:$0xf]  ;;  %360 = vmatprep.mubr.msk.bf16.mxu0 %vm425_vm1, %v424_v0  ;;  %v407_v6 = vld [vmem:[%s557_s3 + $0x8] sm:$0xff]   ;;  %v408_v7 = vld [vmem:[%s557_s3 + $0x10] sm:$0xff]   ;;  %vm312_vm3 = vcmask 31744  }
   0x2   :  { %v27_v2 = vld [vmem:[%s556_s0] sm:$0xff]  ;;  %v43_v3 = vsel %vm41_vm0, %v29_v1, 0  ;;  %364 = vmatprep.subr.bf16.mxu1 %v424_v0  ;;  %380 = vmatprep.mubr.msk.bf16.mxu1 %vm425_vm1, %v424_v0  ;;  %v409_v8 = vld [vmem:[%s557_s3 + $0x18] sm:$0xff]   ;;  %v411_v10 = vld [vmem:[%s557_s3 + $0x28] sm:$0xff]  }
   0x3   :  { %v28_v4 = vpack.c.bf16 %v27_v2, %v27_v2  ;;  %v406_v5 = vld [vmem:[%s557_s3] sm:$0xff]   ;;  %359 = vmatpush3.bf16.msra.mxu0 %v43_v3  ;;  %v412_v11 = vld [vmem:[%s557_s3 + $0x30] sm:$0xff]   ;;  %v413_v12 = vld [vmem:[%s557_s3 + $0x38] sm:$0xff]  }
   0x4   :  { %365 = vmatpush3.bf16.msra.mxu1 %v406_v5  ;;  %384 = vmatprep.subr.bf16.mxu0 %v424_v0  ;;  %v410_v9 = vld [vmem:[%s557_s3 + $0x20] sm:$0xff]   ;;  %v415_v14 = vld [vmem:[%s558_s5 + $0x8] sm:$0xff]   ;;  %v416_v15 = vld [vmem:[%s558_s5 + $0x10] sm:$0xff]  }
   0x5   :  { %366 = vmatprep.subr.bf16.mxu1 %v424_v0  ;;  %v414_v13 = vld [vmem:[%s558_s5] sm:$0xff]   ;;  %v417_v16 = vld [vmem:[%s558_s5 + $0x18] sm:$0xff]   ;;  %v419_v18 = vld [vmem:[%s558_s5 + $0x28] sm:$0xff]  }
   0x6   :  { %361 = vmatmul.mubr.msk.bf16.vlgmr.msra.gmra.mrb[0].mxu0 %vm37_vm2, %v28_v4  ;;  %v418_v17 = vld [vmem:[%s558_s5 + $0x20] sm:$0xff]   ;;  %v420_v27 = vld [vmem:[%s558_s5 + $0x30] sm:$0xff]   ;;  %v421_v28 = vld [vmem:[%s558_s5 + $0x38] sm:$0xff]  }
   0x7   :  { %400 = vmatprep.mubr.msk.bf16.mxu0 %vm425_vm1, %v424_v0  ;;  %385 = vmatpush3.bf16.msra.mxu0 %v414_v13  ;;  %v318_v19 = vld [vmem:[%s559_s2] ss:$0 sm:$0xff] }
   0x8   :  { %367 = vmatpush3.bf16.msra.mxu1 %v407_v6  ;;  %386 = vmatprep.subr.bf16.mxu0 %v424_v0  ;;  %v320_v29 = vld [vmem:[%s560_s4] ss:$0 sm:$0xff] }
   0x9   :  { %368 = vmatprep.subr.bf16.mxu1 %v424_v0  ;;  %v329_v37 = vld [vmem:[%s561_s6] ss:$0 sm:$0xff] }
   0xb   :  { %387 = vmatpush3.bf16.msra.mxu0 %v415_v14 }
   0xc   :  { %369 = vmatpush3.bf16.msra.mxu1 %v408_v7  ;;  %388 = vmatprep.subr.bf16.mxu0 %v424_v0 }
   0xd   :  { %370 = vmatprep.subr.bf16.mxu1 %v424_v0 }
   0xf   :  { %389 = vmatpush3.bf16.msra.mxu0 %v416_v15 }
  0x10   :  { %371 = vmatpush3.bf16.msra.mxu1 %v409_v8  ;;  %390 = vmatprep.subr.bf16.mxu0 %v424_v0 }
  0x11   :  { %372 = vmatprep.subr.bf16.mxu1 %v424_v0 }
  0x13   :  { %391 = vmatpush3.bf16.msra.mxu0 %v417_v16 }
  0x14   :  { %373 = vmatpush3.bf16.msra.mxu1 %v410_v9  ;;  %392 = vmatprep.subr.bf16.mxu0 %v424_v0 }
  0x15   :  { %374 = vmatprep.subr.bf16.mxu1 %v424_v0 }
  0x17   :  { %393 = vmatpush3.bf16.msra.mxu0 %v418_v17 }
  0x18   :  { %375 = vmatpush3.bf16.msra.mxu1 %v411_v10  ;;  %394 = vmatprep.subr.bf16.mxu0 %v424_v0 }
  0x19   :  { %376 = vmatprep.subr.bf16.mxu1 %v424_v0 }
  0x1b   :  { %395 = vmatpush3.bf16.msra.mxu0 %v419_v18 }
  0x1c   :  { %377 = vmatpush3.bf16.msra.mxu1 %v412_v11  ;;  %396 = vmatprep.subr.bf16.mxu0 %v424_v0 }
  0x1d   :  { %378 = vmatprep.subr.bf16.mxu1 %v424_v0 }
  0x1f   :  { %397 = vmatpush3.bf16.msra.mxu0 %v420_v27 }
  0x20   :  { %379 = vmatpush3.bf16.msra.mxu1 %v413_v12  ;;  %398 = vmatprep.subr.bf16.mxu0 %v424_v0 }
  0x23   :  { %399 = vmatpush3.bf16.msra.mxu0 %v421_v28 }
  0xd9   :  { %v79_v20 = vpop.f32.mrb[0].mxu0 }
  0xda   :  { %v80_v21 = vadd.f32 %v318_v19, %v79_v20  ;;  %v362_v22 = vpop.f32.mrb[1].mxu0 }
  0xdb   :  { %v82_v23 = vpop.f32.mrb[2].mxu0 }
  0xdc   :  { %v85_v24 = vmax.f32 %v80_v21, 0.0  ;;  %v363_v25 = vpop.f32.mrb[3].mxu0 }
  0xde   :  { %v86_v26 = vpack.c.bf16 %v85_v24, %v85_v24 }
  0xe0   :  { %381 = vmatmul.mubr.bf16.vlgmr.msra.gmra.mrb[0].mxu1 %v86_v26 }
 0x1b3   :  { %v192_v30 = vpop.f32.mrb[0].mxu1 }
 0x1b4   :  { %v193_v31 = vadd.f32 %v320_v29, %v192_v30  ;;  %v382_v32 = vpop.f32.mrb[1].mxu1 }
 0x1b5   :  { %v195_v33 = vpop.f32.mrb[2].mxu1 }
 0x1b6   :  { %v198_v34 = vmax.f32 %v193_v31, 0.0  ;;  %v383_v35 = vpop.f32.mrb[3].mxu1 }
 0x1b8   :  { %v199_v36 = vpack.c.bf16 %v198_v34, %v198_v34 }
 0x1ba   :  { %401 = vmatmul.mubr.bf16.vlgmr.msra.gmra.mrb[4].mxu0 %v199_v36 }
 0x28d   :  { %v305_v38 = vpop.f32.mrb[4].mxu0 }
 0x28e   :  { %v306_v39 = vadd.f32 %v329_v37, %v305_v38  ;;  %v402_v40 = vpop.f32.mrb[5].mxu0 }
 0x28f   :  { %v308_v41 = vpop.f32.mrb[6].mxu0 }
 0x290   :  { %422 = vtanh.f32 %v306_v39  ;;  %v403_v42 = vpop.f32.mrb[7].mxu0 }
 0x29a   :  { %v423_v43 = vpop.eup %422 }
 0x29b   :  { %313 = vst.msk [vmem:[%s562_s7] sm:$0xff] %vm312_vm3, %v423_v43 }

</bundles_post_ra>
